<compile_context>
chip_gen: v7x
topology: tpu7x:2x2x1
jax: 0.10.0
libtpu: 0.0.40
codegen_flags: <defaults>
</compile_context>

<pallas_src>
import functools

import jax
import jax.numpy as jnp
from jax import lax
from jax.experimental import pallas as pl
from jax.experimental.pallas import tpu as pltpu


_PAD = 8  # sublane-aligned start row for the padded stage-1 activation


# ---------------------------------------------------------------------------
# Fused kernel: one batch element per grid step, everything lane-flattened.
# ---------------------------------------------------------------------------
def _bottleneck_kernel(H, x_ref, w1b_ref, b1_ref, m_ref, b2_ref, w3b_ref,
                       b3_ref, o_ref, yp_ref):
    x = x_ref[0]                                       # (H, W*C) lane-dense
    wp = yp_ref.shape[1]                               # (W+2)*width

    # --- stage 1: conv1x1 (BN1 scale folded) + bias + ReLU -----------------
    # w1b has zero border columns, so y1 already carries the conv2 W-padding
    # (border lanes are exactly 0 after bias=0 and ReLU).
    y1 = jnp.dot(x, w1b_ref[...], preferred_element_type=jnp.float32)
    y1 = jnp.maximum(y1 + b1_ref[...], 0.0)            # (H, (W+2)*width)

    # --- in-VMEM zero padding along H (no HBM round trip) ------------------
    # Body rows start at the sublane-aligned row _PAD -> aligned store; only
    # the two border rows are zeroed each step (safe under megacore split).
    zrow = jnp.zeros((1, wp), jnp.float32)
    yp_ref[_PAD - 1:_PAD, :] = zrow
    yp_ref[_PAD + H:_PAD + H + 1, :] = zrow
    yp_ref[_PAD:_PAD + H, :] = y1

    # --- stage 2: conv3x3 as 3 banded matmuls (kx taps + channels folded
    #     into the contraction dim) + BN2 + ReLU -----------------------------
    y2 = jnp.dot(yp_ref[_PAD - 1:_PAD - 1 + H, :], m_ref[0],
                 preferred_element_type=jnp.float32)
    y2 = y2 + jnp.dot(yp_ref[_PAD:_PAD + H, :], m_ref[1],
                      preferred_element_type=jnp.float32)
    y2 = y2 + jnp.dot(yp_ref[_PAD + 1:_PAD + 1 + H, :], m_ref[2],
                      preferred_element_type=jnp.float32)
    y2 = jnp.maximum(y2 + b2_ref[...], 0.0)            # (H, W*width)

    # --- stage 3: conv1x1 (BN3 scale folded) + bias + residual + ReLU ------
    y3 = jnp.dot(y2, w3b_ref[...], preferred_element_type=jnp.float32)
    o_ref[0] = jnp.maximum(y3 + b3_ref[...] + x, 0.0)  # (H, W*C) lane-dense


# ---------------------------------------------------------------------------
# Weight packing: fold BN scales, build lane-flattened conv matrices.
# ---------------------------------------------------------------------------
def _pack_params(params, W):
    w1, s1, b1, w2, s2, b2, w3, s3, b3 = params
    C, width = w1.shape
    f32 = jnp.float32
    eye_w = jnp.eye(W, dtype=f32)

    # stage 1: block-diagonal over W positions; zero border columns give the
    # W-padding for conv2.  Flattened col index = (w+1)*width + co.
    w1s = w1 * s1[None, :]
    w1b = jnp.einsum('xy,io->xiyo', eye_w, w1s).reshape(W * C, W * width)
    w1b = jnp.pad(w1b, ((0, 0), (width, width)))          # (W*C, (W+2)*width)
    b1f = jnp.pad(jnp.tile(b1, W), (width, width)).reshape(1, (W + 2) * width)

    # stage 2: one banded matrix per ky tap:
    #   M_ky[(w+kx)*width + ci, w*width + co] = w2[ky, kx, ci, co] * s2[co]
    w2s = w2.reshape(3, 3, width, width) * s2[None, None, None, :]
    ms = []
    for ky in range(3):
        m = jnp.zeros(((W + 2) * width, W * width), f32)
        for kx in range(3):
            shift = jnp.eye(W + 2, W, k=-kx, dtype=f32)    # shift[w+kx, w] = 1
            m = m + jnp.einsum('pw,io->piwo', shift, w2s[ky, kx]).reshape(
                (W + 2) * width, W * width)
        ms.append(m)
    m_stk = jnp.stack(ms)                                  # (3, (W+2)*width, W*width)
    b2f = jnp.tile(b2, W).reshape(1, W * width)

    # stage 3: block-diagonal, lane-dense (W*C wide) output.
    w3s = w3 * s3[None, :]
    w3b = jnp.einsum('xy,io->xiyo', eye_w, w3s).reshape(W * width, W * C)
    b3f = jnp.tile(b3, W).reshape(1, W * C)
    return w1b, b1f, m_stk, b2f, w3b, b3f


# ---------------------------------------------------------------------------
# Wrapper
# ---------------------------------------------------------------------------
def bottleneck_forward(x_nhwc, params):
    N, H, W, C = x_nhwc.shape
    width = params[0].shape[1]
    w1b, b1f, m_stk, b2f, w3b, b3f = _pack_params(params, W)

    WC = W * C                 # lane-dense activation width (128 at demo size)
    WP = (W + 2) * width       # padded stage-1 row width
    WW = W * width             # stage-2 output row width

    x3 = x_nhwc.reshape(N, H, WC)                      # free reshape (contiguous)
    kernel = functools.partial(_bottleneck_kernel, H)

    out = pl.pallas_call(
        kernel,
        out_shape=jax.ShapeDtypeStruct((N, H, WC), jnp.float32),
        grid_spec=pltpu.PrefetchScalarGridSpec(
            num_scalar_prefetch=0,
            grid=(N,),
            in_specs=[
                pl.BlockSpec((1, H, WC), lambda b: (b, 0, 0)),   # x (lane-dense)
                pl.BlockSpec((WC, WP), lambda b: (0, 0)),        # w1 block-diag
                pl.BlockSpec((1, WP), lambda b: (0, 0)),         # bn1 bias
                pl.BlockSpec((3, WP, WW), lambda b: (0, 0, 0)),  # conv2 banded
                pl.BlockSpec((1, WW), lambda b: (0, 0)),         # bn2 bias
                pl.BlockSpec((WW, WC), lambda b: (0, 0)),        # w3 block-diag
                pl.BlockSpec((1, WC), lambda b: (0, 0)),         # bn3 bias
            ],
            out_specs=pl.BlockSpec((1, H, WC), lambda b: (b, 0, 0)),
            scratch_shapes=[pltpu.VMEM((_PAD + H + 8, WP), jnp.float32)],
        ),
        compiler_params=pltpu.CompilerParams(
            dimension_semantics=("parallel",)),
    )(x3, w1b, b1f, m_stk, b2f, w3b, b3f)
    return out.reshape(N, H, W, C)


# ---------------------------------------------------------------------------
# Deterministic parameter construction (synthetic, no checkpoint)
# ---------------------------------------------------------------------------
def make_params(key, C, width, eps=1e-5):
    ks = jax.random.split(key, 15)
    w1 = 0.2 * jax.random.normal(ks[0], (C, width), jnp.float32)         # conv1 (Cin,width)
    w2 = 0.2 * jax.random.normal(ks[1], (9, width, width), jnp.float32)  # conv2 (ky*3+kx,Cin,Cout)
    w3 = 0.2 * jax.random.normal(ks[2], (width, C), jnp.float32)         # conv3 (width,Cin)

    def bn(kg, kb, km, kv, n):
        gamma = 1.0 + 0.1 * jax.random.normal(kg, (n,), jnp.float32)
        beta = 0.1 * jax.random.normal(kb, (n,), jnp.float32)
        mean = 0.1 * jax.random.normal(km, (n,), jnp.float32)
        var = 0.5 + jax.random.uniform(kv, (n,), jnp.float32)
        scale = gamma * lax.rsqrt(var + eps)
        bias = beta - mean * scale
        return scale, bias

    s1, b1 = bn(ks[3], ks[4], ks[5], ks[6], width)
    s2, b2 = bn(ks[7], ks[8], ks[9], ks[10], width)
    s3, b3 = bn(ks[11], ks[12], ks[13], ks[14], C)
    return (w1, s1, b1, w2, s2, b2, w3, s3, b3)


# Pure-JAX reference for correctness check
def reference(x_nhwc, params):
    w1, s1, b1, w2, s2, b2, w3, s3, b3 = params
    width = w1.shape[1]
    hi = lax.Precision.HIGHEST
    y = jnp.einsum('nhwc,cd->nhwd', x_nhwc, w1, precision=hi)
    y = jnp.maximum(y * s1 + b1, 0.0)
    w2_hwio = w2.reshape(3, 3, width, width)
    y = lax.conv_general_dilated(y, w2_hwio, window_strides=(1, 1),
                                 padding='SAME',
                                 dimension_numbers=('NHWC', 'HWIO', 'NHWC'),
                                 precision=hi)
    y = jnp.maximum(y * s2 + b2, 0.0)
    y = jnp.einsum('nhwd,dc->nhwc', y, w3, precision=hi)
    y = y * s3 + b3
    return jnp.maximum(y + x_nhwc, 0.0)


if __name__ == "__main__":
    # Bottleneck(inplanes=8, planes=..., _expansion=2)  ->  width = 8 // 2 = 4
    N, C, H, W = 2, 8, 16, 16
    width = C // 2

    key = jax.random.PRNGKey(0)
    kx, kp = jax.random.split(key)
    x_nchw = jax.random.normal(kx, (N, C, H, W), jnp.float32)   # PyTorch NCHW input
    x_nhwc = jnp.transpose(x_nchw, (0, 2, 3, 1))                # kernel layout

    params = make_params(kp, C, width)

    out_nhwc = bottleneck_forward(x_nhwc, params)
    out_nhwc = jax.block_until_ready(out_nhwc)
    out_nchw = jnp.transpose(out_nhwc, (0, 3, 1, 2))            # back to NCHW

    ref = reference(x_nhwc, params)
    max_err = float(jnp.max(jnp.abs(out_nhwc - ref)))
    assert max_err < 5e-2, f"max abs error too large: {max_err}"
    print("KERNEL_OK")
</pallas_src>

<mosaic_0001>
module attributes {stable_mosaic.version = 11 : i64} {
  func.func @_bottleneck_kernel(%arg0: i32, %arg1: memref<1x16x128xf32, #tpu.memory_space<vmem>>, %arg2: memref<128x72xf32, #tpu.memory_space<vmem>>, %arg3: memref<1x72xf32, #tpu.memory_space<vmem>>, %arg4: memref<3x72x64xf32, #tpu.memory_space<vmem>>, %arg5: memref<1x64xf32, #tpu.memory_space<vmem>>, %arg6: memref<64x128xf32, #tpu.memory_space<vmem>>, %arg7: memref<1x128xf32, #tpu.memory_space<vmem>>, %arg8: memref<1x16x128xf32, #tpu.memory_space<vmem>>, %arg9: memref<32x72xf32, #tpu.memory_space<vmem>>) attributes {dimension_semantics = [#tpu.dimension_semantics<parallel>], iteration_bounds = array<i64: 2>, scalar_prefetch = 0 : i64, scratch_operands = 1 : i64, tpu.core_type = #tpu.core_type<tc>, window_params = [{transform_indices = @transform_0, window_bounds = array<i64: 1, 16, 128>}, {pipeline_mode = #tpu.pipeline_mode<synchronous>, transform_indices = @transform_1, window_bounds = array<i64: 128, 72>}, {pipeline_mode = #tpu.pipeline_mode<synchronous>, transform_indices = @transform_2, window_bounds = array<i64: 1, 72>}, {pipeline_mode = #tpu.pipeline_mode<synchronous>, transform_indices = @transform_3, window_bounds = array<i64: 3, 72, 64>}, {pipeline_mode = #tpu.pipeline_mode<synchronous>, transform_indices = @transform_4, window_bounds = array<i64: 1, 64>}, {pipeline_mode = #tpu.pipeline_mode<synchronous>, transform_indices = @transform_5, window_bounds = array<i64: 64, 128>}, {pipeline_mode = #tpu.pipeline_mode<synchronous>, transform_indices = @transform_6, window_bounds = array<i64: 1, 128>}, {transform_indices = @transform_7, window_bounds = array<i64: 1, 16, 128>}]} {
    %c0 = arith.constant 0 : index
    %c0_0 = arith.constant 0 : index
    %c0_1 = arith.constant 0 : index
    %0 = vector.load %arg1[%c0, %c0_0, %c0_1] : memref<1x16x128xf32, #tpu.memory_space<vmem>>, vector<1x16x128xf32>
    %1 = vector.shape_cast %0 : vector<1x16x128xf32> to vector<16x128xf32>
    %c0_2 = arith.constant 0 : index
    %c0_3 = arith.constant 0 : index
    %2 = vector.load %arg2[%c0_2, %c0_3] : memref<128x72xf32, #tpu.memory_space<vmem>>, vector<128x72xf32>
    %cst = arith.constant dense<0.000000e+00> : vector<16x72xf32>
    %3 = tpu.matmul %1, %2, %cst {dimension_numbers = #tpu.dot_dimension_numbers<[1], [0], [0], [1], [0, 0, 1, 1], [], []>} : vector<16x128xf32>, vector<128x72xf32>, vector<16x72xf32> -> vector<16x72xf32>
    %c0_4 = arith.constant 0 : index
    %c0_5 = arith.constant 0 : index
    %4 = vector.load %arg3[%c0_4, %c0_5] : memref<1x72xf32, #tpu.memory_space<vmem>>, vector<1x72xf32>
    %5 = vector.broadcast %4 : vector<1x72xf32> to vector<16x72xf32>
    %6 = arith.addf %3, %5 : vector<16x72xf32>
    %cst_6 = arith.constant 0.000000e+00 : f32
    %7 = vector.broadcast %cst_6 : f32 to vector<16x72xf32>
    %8 = arith.maximumf %6, %7 : vector<16x72xf32>
    %cst_7 = arith.constant 0.000000e+00 : f32
    %9 = vector.broadcast %cst_7 : f32 to vector<1x72xf32>
    %c7 = arith.constant 7 : index
    %c0_8 = arith.constant 0 : index
    %10 = vector.load %arg9[%c7, %c0_8] : memref<32x72xf32, #tpu.memory_space<vmem>>, vector<1x72xf32>
    tpu.vector_store %arg9[%c7, %c0_8], %9 {strides = array<i32>} : memref<32x72xf32, #tpu.memory_space<vmem>>, vector<1x72xf32>,
    %c24 = arith.constant 24 : index
    %c0_9 = arith.constant 0 : index
    %11 = vector.load %arg9[%c24, %c0_9] : memref<32x72xf32, #tpu.memory_space<vmem>>, vector<1x72xf32>
    tpu.vector_store %arg9[%c24, %c0_9], %9 {strides = array<i32>} : memref<32x72xf32, #tpu.memory_space<vmem>>, vector<1x72xf32>,
    %c8 = arith.constant 8 : index
    %c0_10 = arith.constant 0 : index
    %12 = vector.load %arg9[%c8, %c0_10] : memref<32x72xf32, #tpu.memory_space<vmem>>, vector<16x72xf32>
    tpu.vector_store %arg9[%c8, %c0_10], %8 {strides = array<i32>} : memref<32x72xf32, #tpu.memory_space<vmem>>, vector<16x72xf32>,
    %c7_11 = arith.constant 7 : index
    %c0_12 = arith.constant 0 : index
    %13 = vector.load %arg9[%c7_11, %c0_12] : memref<32x72xf32, #tpu.memory_space<vmem>>, vector<16x72xf32>
    %c0_13 = arith.constant 0 : index
    %c0_14 = arith.constant 0 : index
    %c0_15 = arith.constant 0 : index
    %14 = vector.load %arg4[%c0_13, %c0_14, %c0_15] : memref<3x72x64xf32, #tpu.memory_space<vmem>>, vector<1x72x64xf32>
    %15 = vector.shape_cast %14 : vector<1x72x64xf32> to vector<72x64xf32>
    %cst_16 = arith.constant dense<0.000000e+00> : vector<16x64xf32>
    %16 = tpu.matmul %13, %15, %cst_16 {dimension_numbers = #tpu.dot_dimension_numbers<[1], [0], [0], [1], [0, 0, 1, 1], [], []>} : vector<16x72xf32>, vector<72x64xf32>, vector<16x64xf32> -> vector<16x64xf32>
    %c8_17 = arith.constant 8 : index
    %c0_18 = arith.constant 0 : index
    %17 = vector.load %arg9[%c8_17, %c0_18] : memref<32x72xf32, #tpu.memory_space<vmem>>, vector<16x72xf32>
    %c1 = arith.constant 1 : index
    %c0_19 = arith.constant 0 : index
    %c0_20 = arith.constant 0 : index
    %18 = vector.load %arg4[%c1, %c0_19, %c0_20] : memref<3x72x64xf32, #tpu.memory_space<vmem>>, vector<1x72x64xf32>
    %19 = vector.shape_cast %18 : vector<1x72x64xf32> to vector<72x64xf32>
    %cst_21 = arith.constant dense<0.000000e+00> : vector<16x64xf32>
    %20 = tpu.matmul %17, %19, %cst_21 {dimension_numbers = #tpu.dot_dimension_numbers<[1], [0], [0], [1], [0, 0, 1, 1], [], []>} : vector<16x72xf32>, vector<72x64xf32>, vector<16x64xf32> -> vector<16x64xf32>
    %21 = arith.addf %16, %20 : vector<16x64xf32>
    %c9 = arith.constant 9 : index
    %c0_22 = arith.constant 0 : index
    %22 = vector.load %arg9[%c9, %c0_22] : memref<32x72xf32, #tpu.memory_space<vmem>>, vector<16x72xf32>
    %c2 = arith.constant 2 : index
    %c0_23 = arith.constant 0 : index
    %c0_24 = arith.constant 0 : index
    %23 = vector.load %arg4[%c2, %c0_23, %c0_24] : memref<3x72x64xf32, #tpu.memory_space<vmem>>, vector<1x72x64xf32>
    %24 = vector.shape_cast %23 : vector<1x72x64xf32> to vector<72x64xf32>
    %cst_25 = arith.constant dense<0.000000e+00> : vector<16x64xf32>
    %25 = tpu.matmul %22, %24, %cst_25 {dimension_numbers = #tpu.dot_dimension_numbers<[1], [0], [0], [1], [0, 0, 1, 1], [], []>} : vector<16x72xf32>, vector<72x64xf32>, vector<16x64xf32> -> vector<16x64xf32>
    %26 = arith.addf %21, %25 : vector<16x64xf32>
    %c0_26 = arith.constant 0 : index
    %c0_27 = arith.constant 0 : index
    %27 = vector.load %arg5[%c0_26, %c0_27] : memref<1x64xf32, #tpu.memory_space<vmem>>, vector<1x64xf32>
    %28 = vector.broadcast %27 : vector<1x64xf32> to vector<16x64xf32>
    %29 = arith.addf %26, %28 : vector<16x64xf32>
    %cst_28 = arith.constant 0.000000e+00 : f32
    %30 = vector.broadcast %cst_28 : f32 to vector<16x64xf32>
    %31 = arith.maximumf %29, %30 : vector<16x64xf32>
    %c0_29 = arith.constant 0 : index
    %c0_30 = arith.constant 0 : index
    %32 = vector.load %arg6[%c0_29, %c0_30] : memref<64x128xf32, #tpu.memory_space<vmem>>, vector<64x128xf32>
    %cst_31 = arith.constant dense<0.000000e+00> : vector<16x128xf32>
    %33 = tpu.matmul %31, %32, %cst_31 {dimension_numbers = #tpu.dot_dimension_numbers<[1], [0], [0], [1], [0, 0, 1, 1], [], []>} : vector<16x64xf32>, vector<64x128xf32>, vector<16x128xf32> -> vector<16x128xf32>
    %c0_32 = arith.constant 0 : index
    %c0_33 = arith.constant 0 : index
    %34 = vector.load %arg7[%c0_32, %c0_33] : memref<1x128xf32, #tpu.memory_space<vmem>>, vector<1x128xf32>
    %35 = vector.broadcast %34 : vector<1x128xf32> to vector<16x128xf32>
    %36 = arith.addf %33, %35 : vector<16x128xf32>
    %37 = arith.addf %36, %1 : vector<16x128xf32>
    %cst_34 = arith.constant 0.000000e+00 : f32
    %38 = vector.broadcast %cst_34 : f32 to vector<16x128xf32>
    %39 = arith.maximumf %37, %38 : vector<16x128xf32>
    %c0_35 = arith.constant 0 : index
    %c0_36 = arith.constant 0 : index
    %c0_37 = arith.constant 0 : index
    %40 = vector.load %arg8[%c0_35, %c0_36, %c0_37] : memref<1x16x128xf32, #tpu.memory_space<vmem>>, vector<1x16x128xf32>
    %41 = vector.shape_cast %40 : vector<1x16x128xf32> to vector<16x128xf32>
    %42 = vector.shape_cast %39 : vector<16x128xf32> to vector<1x16x128xf32>
    tpu.vector_store %arg8[%c0_35, %c0_36, %c0_37], %42 {strides = array<i32>} : memref<1x16x128xf32, #tpu.memory_space<vmem>>, vector<1x16x128xf32>,
    return
  }
  func.func @transform_0(%arg0: i32) -> (i32, i32, i32) {
    %c0_i32 = arith.constant 0 : i32
    %c0_i32_0 = arith.constant 0 : i32
    %c0_i32_1 = arith.constant 0 : i32
    return %arg0, %c0_i32, %c0_i32_0 : i32, i32, i32
  }
  func.func @transform_1(%arg0: i32) -> (i32, i32) {
    %c0_i32 = arith.constant 0 : i32
    %c0_i32_0 = arith.constant 0 : i32
    %c0_i32_1 = arith.constant 0 : i32
    return %c0_i32, %c0_i32_0 : i32, i32
  }
  func.func @transform_2(%arg0: i32) -> (i32, i32) {
    %c0_i32 = arith.constant 0 : i32
    %c0_i32_0 = arith.constant 0 : i32
    %c0_i32_1 = arith.constant 0 : i32
    return %c0_i32, %c0_i32_0 : i32, i32
  }
  func.func @transform_3(%arg0: i32) -> (i32, i32, i32) {
    %c0_i32 = arith.constant 0 : i32
    %c0_i32_0 = arith.constant 0 : i32
    %c0_i32_1 = arith.constant 0 : i32
    %c0_i32_2 = arith.constant 0 : i32
    return %c0_i32, %c0_i32_0, %c0_i32_1 : i32, i32, i32
  }
  func.func @transform_4(%arg0: i32) -> (i32, i32) {
    %c0_i32 = arith.constant 0 : i32
    %c0_i32_0 = arith.constant 0 : i32
    %c0_i32_1 = arith.constant 0 : i32
    return %c0_i32, %c0_i32_0 : i32, i32
  }
  func.func @transform_5(%arg0: i32) -> (i32, i32) {
    %c0_i32 = arith.constant 0 : i32
    %c0_i32_0 = arith.constant 0 : i32
    %c0_i32_1 = arith.constant 0 : i32
    return %c0_i32, %c0_i32_0 : i32, i32
  }
  func.func @transform_6(%arg0: i32) -> (i32, i32) {
    %c0_i32 = arith.constant 0 : i32
    %c0_i32_0 = arith.constant 0 : i32
    %c0_i32_1 = arith.constant 0 : i32
    return %c0_i32, %c0_i32_0 : i32, i32
  }
  func.func @transform_7(%arg0: i32) -> (i32, i32, i32) {
    %c0_i32 = arith.constant 0 : i32
    %c0_i32_0 = arith.constant 0 : i32
    %c0_i32_1 = arith.constant 0 : i32
    return %arg0, %c0_i32, %c0_i32_0 : i32, i32, i32
  }
}

</mosaic_0001>

<bundles_post_ra>
// kernel: tpu_custom_call.1
= control target key start
LH: loop header
LB: loop body
LE: loop exit
PB: predicated region body
PF: predicated region fallthrough
CT: control target
= control target key end

     0   :  { %12 = vsyncpa [#allocation4], 0  ;;  %s1611_s0 = inlined_call_operand.vmem [shape: f32[2,16,128], index: 0, kind: input, shape index: {}]   ;;  %s1612_s1 = inlined_call_operand.vmem [shape: f32[128,72], index: 1, kind: input, shape index: {}]   ;;  %s1613_s2 = inlined_call_operand.vmem [shape: f32[1,72], index: 2, kind: input, shape index: {}]   ;;  %s1614_s3 = inlined_call_operand.vmem [shape: f32[3,72,64], index: 3, kind: input, shape index: {}]   ;;  %s1615_s4 = inlined_call_operand.vmem [shape: f32[1,64], index: 4, kind: input, shape index: {}]   ;;  %s1616_s5 = inlined_call_operand.vmem [shape: f32[64,128], index: 5, kind: input, shape index: {}]   ;;  %s1617_s6 = inlined_call_operand.vmem [shape: f32[1,128], index: 6, kind: input, shape index: {}]   ;;  %s1618_s7 = inlined_call_operand.hbm [shape: f32[2,16,128], index: 7, kind: output, shape index: {}]  }
   0x1   :  { %14 = vsyncpa [#allocation4 + $0x1], 0  ;;  %s1326_s24 = smov 0   ;;  %s1328_s25 = smov 0  }
   0x2   :  { %s1330_s26 = smov 0   ;;  %s1332_s27 = smov 0  }
   0x3 LB: > { %s1347_s28 = sadd.s32 4294967295, %s1280_s27   ;;  %s855_s29 = sadd.s32 4294967294, %s1280_s27   ;;  %s1280_s27 = sphi %s1332_s27, %s1624_s27   ;;  %s1276_s26 = sphi %s1330_s26, %s1623_s26   ;;  %s1272_s25 = sphi %s1328_s25, %s1622_s25   ;;  %s1268_s24 = sphi %s1326_s24, %s1621_s24  }
   0x4   : > { %s1351_s30 = sadd.s32 1, %s1280_s27   ;;  %s179_s8 = sadd.s32 1, %s1276_s26 }
   0x5   : > { %s176_s9 = ssub.s32 %s1280_s27, %s1351_s30  ;;  %p189_p0 = scmp.ne.s32.totalorder %s1276_s26, %s1272_s25 }
   0x6   : > { %p177_p1 = scmp.eq.s32.totalorder %s176_s9, 0  ;;  %p190_p2 = scmp.eq.s32.totalorder %s1347_s28, 1 }
   0x7   : > { %p195_p3 = scmp.ne.s32.totalorder %s1272_s25, %s1268_s24  ;;  %p196_p4 = scmp.eq.s32.totalorder %s855_s29, 1 }
   0x8   : > { %s1362_s10 = scalar_select %p177_p1, %s1276_s26, %s179_s8  }
   0x9   : > { %p1364_p5 = por %p190_p2, %p189_p0  ;;  %p1368_p6 = por %p196_p4, %p195_p3 }
   0xa   : > { %p858_p7 = scmp.ge.s32.totalorder %s1280_s27, 1  ;;  %p240_p8 = scmp.lt.s32.totalorder %s1280_s27, 3 }
   0xc   : > { %p241_p9 = pnand %p858_p7, %p240_p8 }
   0xd   : > { %v279_v0 = vld [vmem:[%s1612_s1] sm:$0xff] (!%p241_p9)  ;;  %v280_v1 = vld [vmem:[%s1612_s1 + $0x8] sm:$0xff] (!%p241_p9)  ;;  %v281_v2 = vld [vmem:[%s1612_s1 + $0x10] sm:$0xff] (!%p241_p9)  ;;  %p272_p10 = scmp.lt.s32.totalorder (!%p241_p9), %s1347_s28, 1  ;;  %vm379_vm0 = vcmask (!%p241_p9), 581632   ;;  %v1282_v38 = vmov (!%p241_p9), 0.0  }
   0xe   : > { %244 = sbr.rel (%p241_p9) target bundleno = 762 (0x2fa), region = 48  ;;  %v1076_v3 = vpack.c.bf16 (!%p241_p9), %v280_v1, %v279_v0  ;;  %v282_v4 = vld [vmem:[%s1612_s1 + $0x18] sm:$0xff] (!%p241_p9)  ;;  %v283_v6 = vld [vmem:[%s1612_s1 + $0x20] sm:$0xff] (!%p241_p9)  ;;  %v284_v7 = vld [vmem:[%s1612_s1 + $0x28] sm:$0xff] (!%p241_p9)  ;;  %380 = vst.msk [vmem:[#allocation2 + $0x7] sm:$0x1] (!%p241_p9), %vm379_vm0, %v1282_v38 }
   0xf   : > { %v1080_v5 = vpack.c.bf16 (!%p241_p9), %v282_v4, %v281_v2  ;;  %v1084_v8 = vpack.c.bf16 (!%p241_p9), %v284_v7, %v283_v6  ;;  %v863_v9 = vld [vmem:[%s1614_s3 + $0x48] sm:$0xff] (!%p241_p9)  ;;  %v864_v10 = vld [vmem:[%s1614_s3 + $0x50] sm:$0xff] (!%p241_p9)  ;;  %v286_v12 = vld [vmem:[%s1612_s1 + $0x38] sm:$0xff] (!%p241_p9)  ;;  %381 = vst.msk [vmem:[#allocation2 + $0x18] sm:$0x1] (!%p241_p9), %vm379_vm0, %v1282_v38  ;;  %vm382_vm1 = vcmask (!%p241_p9), 588800  }
  0x10   : > { %1077 = vmatprep.subr.bf16.mxu0 (!%p241_p9), %v1076_v3  ;;  %v285_v11 = vld [vmem:[%s1612_s1 + $0x30] sm:$0xff] (!%p241_p9)  ;;  %v1108_v14 = vpack.c.bf16 (!%p241_p9), %v864_v10, %v863_v9  ;;  %v287_v16 = vld [vmem:[%s1612_s1 + $0x40] sm:$0xff] (!%p241_p9)  ;;  %v288_v17 = vld [vmem:[%s1612_s1 + $0x48] sm:$0xff] (!%p241_p9)  ;;  %vm691_vm2 = vcmask (!%p241_p9), 523264   ;;  %s269_s13 = sand.u32 (!%p241_p9), 1, %s1272_s25   ;;  %s897_s20 = sshll.u32 (!%p241_p9), %s1347_s28, 8 }
  0x11   : > { %1079 = vmatpush3.bf16.msra.mxu0 (!%p241_p9), %v1076_v3  ;;  %v1088_v15 = vpack.c.bf16 (!%p241_p9), %v286_v12, %v285_v11  ;;  %v1092_v18 = vpack.c.bf16 (!%p241_p9), %v288_v17, %v287_v16  ;;  %v289_v19 = vld [vmem:[%s1612_s1 + $0x50] sm:$0xff] (!%p241_p9)  ;;  %v290_v20 = vld [vmem:[%s1612_s1 + $0x58] sm:$0xff] (!%p241_p9)  ;;  %v291_v22 = vld [vmem:[%s1612_s1 + $0x60] sm:$0xff] (!%p241_p9)  ;;  %s859_s14 = sshll.u32 (!%p241_p9), %s269_s13, 4  ;;  %s1568_s22 = scalar_lea.hbm (!%p241_p9), %s1618_s7, %s897_s20 }
  0x12   : > { %1081 = vmatprep.subr.bf16.mxu0 (!%p241_p9), %v1080_v5  ;;  %1109 = vmatprep.subr.bf16.mxu1 (!%p241_p9), %v1108_v14  ;;  %v1096_v21 = vpack.c.bf16 (!%p241_p9), %v290_v20, %v289_v19  ;;  %v292_v23 = vld [vmem:[%s1612_s1 + $0x68] sm:$0xff] (!%p241_p9)  ;;  %v293_v25 = vld [vmem:[%s1612_s1 + $0x70] sm:$0xff] (!%p241_p9)  ;;  %v294_v26 = vld [vmem:[%s1612_s1 + $0x78] sm:$0xff] (!%p241_p9)  ;;  %s271_s18 = scalar_lea.vmem (!%p241_p9), [#allocation3], %s859_s14  ;;  %s1570_s23 = scalar_lea.sflag (!%p241_p9), [#allocation4], %s269_s13 }
  0x13   : > { %1111 = vmatpush3.bf16.msra.mxu1 (!%p241_p9), %v1108_v14  ;;  %v1100_v24 = vpack.c.bf16 (!%p241_p9), %v292_v23, %v291_v22  ;;  %v1104_v27 = vpack.c.bf16 (!%p241_p9), %v294_v26, %v293_v25  ;;  %v865_v29 = vld [vmem:[%s1614_s3 + $0x58] sm:$0xff] (!%p241_p9)  ;;  %v866_v30 = vld [vmem:[%s1614_s3 + $0x60] sm:$0xff] (!%p241_p9)  ;;  %v867_v32 = vld [vmem:[%s1614_s3 + $0x68] sm:$0xff] (!%p241_p9)  ;;  %s793_s19 = sshll.u32 (!%p241_p9), %s271_s18, 4  ;;  %s1283_s29 = smov (!%p241_p9), [#allocation3]   ;;  %s1563_s19 = int_to_ptr.vmem [resolvable:$true] %s793_s19 }
  0x14   : > { %v1112_v31 = vpack.c.bf16 (!%p241_p9), %v866_v30, %v865_v29  ;;  %v868_v33 = vld [vmem:[%s1614_s3 + $0x70] sm:$0xff] (!%p241_p9)  ;;  %v869_v35 = vld [vmem:[%s1614_s3 + $0x78] sm:$0xff] (!%p241_p9)  ;;  %v870_v36 = vld [vmem:[%s1614_s3 + $0x80] sm:$0xff] (!%p241_p9) }
  0x15   : > { %s273_s8 = scalar_select %p272_p10, %s1347_s28, 1  ;;  %1083 = vmatpush3.bf16.msra.mxu0 %v1080_v5  ;;  %v1116_v34 = vpack.c.bf16 %v868_v33, %v867_v32  ;;  %v1120_v37 = vpack.c.bf16 %v870_v36, %v869_v35  ;;  %v871_v39 = vld [vmem:[%s1614_s3 + $0x88] sm:$0xff]  ;;  %v387_v40 = vld [vmem:[%s1614_s3] sm:$0xff]  ;;  %v678_v45 = vld [vmem:[%s1616_s5 + $0x10] sm:$0xff] }
  0x16   : > { %1085 = vmatprep.subr.bf16.mxu0 %v1084_v8  ;;  %1113 = vmatprep.subr.bf16.mxu1 %v1112_v31  ;;  %v388_v41 = vld [vmem:[%s1614_s3 + $0x8] sm:$0xff]  ;;  %v676_v43 = vld [vmem:[%s1616_s5] sm:$0xff]  ;;  %v679_v47 = vld [vmem:[%s1616_s5 + $0x18] sm:$0xff]  ;;  %s1218_s28 = scalar_lea.vmem %s1563_s19, 256 }
  0x17   : > { %s896_s9 = sshll.u32 %s273_s8, 4  ;;  %1115 = vmatpush3.bf16.msra.mxu1 %v1112_v31  ;;  %v1124_v42 = vpack.c.bf16 %v388_v41, %v387_v40  ;;  %v677_v44 = vld [vmem:[%s1616_s5 + $0x8] sm:$0xff]  ;;  %v1160_v48 = vpack.c.bf16 %v679_v47, %v678_v45  ;;  %v680_v49 = vld [vmem:[%s1616_s5 + $0x20] sm:$0xff]  ;;  %v389_v59 = vld [vmem:[%s1614_s3 + $0x10] sm:$0xff]  ;;  %p1219_p11 = scmp.ne.s32.totalorder %s1563_s19, %s1218_s28 }
  0x18   : > { %s1397_s15 = scalar_lea.vmem %s1611_s0, %s896_s9  ;;  %1117 = vmatprep.subr.bf16.mxu1 %v1116_v34  ;;  %v1156_v46 = vpack.c.bf16 %v677_v44, %v676_v43  ;;  %v681_v50 = vld [vmem:[%s1616_s5 + $0x28] sm:$0xff]  ;;  %v862_v52 = vld [vmem:[%s1613_s2] ss:$0 sm:$0xff]  ;;  %v390_v60 = vld [vmem:[%s1614_s3 + $0x18] sm:$0xff]  ;;  %s1222_s8 = sshll.u32 %s1283_s29, 4  ;;  %s1223_s8 = int_to_ptr.vmem [resolvable:$false] %s1222_s8 }
  0x19   : > { %v1412_v13 = vld [vmem:[%s1397_s15] sm:$0xff]  ;;  %1087 = vmatpush3.bf16.msra.mxu0 %v1084_v8  ;;  %v1440_v28 = vld [vmem:[%s1397_s15 + $0x8] sm:$0xff]  ;;  %v1164_v51 = vpack.c.bf16 %v681_v50, %v680_v49  ;;  %v1128_v62 = vpack.c.bf16 %v390_v60, %v389_v59  ;;  %v393_v4 = vld [vmem:[%s1614_s3 + $0x30] sm:$0xff]  ;;  %p1220_p12 = pnand %p1219_p11, %p1364_p5  ;;  %s1224_s9 = scalar_lea.vmem %s1223_s8, 512 }
  0x1a   : > { %991 = vmatprep.mubr.f32.mxu0 %v1412_v13  ;;  %1089 = vmatprep.subr.bf16.mxu0 %v1088_v15  ;;  %v391_v0 = vld [vmem:[%s1614_s3 + $0x20] sm:$0xff]  ;;  %v392_v1 = vld [vmem:[%s1614_s3 + $0x28] sm:$0xff]  ;;  %v394_v5 = vld [vmem:[%s1614_s3 + $0x38] sm:$0xff]  ;;  %p1225_p0 = scmp.lt.s32.totalorder %s1563_s19, %s1223_s8  ;;  %p1226_p1 = scmp.lt.s32.totalorder %s1224_s9, %s1218_s28 }
  0x1b   : > { %1119 = vmatpush3.bf16.msra.mxu1 %v1116_v34  ;;  %v1132_v3 = vpack.c.bf16 %v392_v1, %v391_v0  ;;  %v1136_v6 = vpack.c.bf16 %v394_v5, %v393_v4  ;;  %v395_v7 = vld [vmem:[%s1614_s3 + $0x40] sm:$0xff]  ;;  %v876_v8 = vld [vmem:[%s1614_s3 + $0x90] sm:$0xff]  ;;  %v877_v9 = vld [vmem:[%s1614_s3 + $0x98] sm:$0xff]  ;;  %p1221_p13 = pneg %p1220_p12 }
  0x1c   : > { %1121 = vmatprep.subr.bf16.mxu1 %v1120_v37  ;;  %v878_v10 = vld [vmem:[%s1614_s3 + $0xa0] sm:$0xff]  ;;  %v879_v11 = vld [vmem:[%s1614_s3 + $0xa8] sm:$0xff]  ;;  %v1140_v12 = vpack.c.bf16 %v877_v9, %v876_v8  ;;  %v880_v16 = vld [vmem:[%s1614_s3 + $0xb0] sm:$0xff]  ;;  %p1227_p2 = por %p1226_p1, %p1225_p0 }
  0x1d   : > { %1091 = vmatpush3.bf16.msra.mxu0 %v1088_v15  ;;  %v1144_v14 = vpack.c.bf16 %v879_v11, %v878_v10  ;;  %v881_v17 = vld [vmem:[%s1614_s3 + $0xb8] sm:$0xff]  ;;  %v882_v20 = vld [vmem:[%s1614_s3 + $0xc0] sm:$0xff]  ;;  %v884_v23 = vld [vmem:[%s1614_s3 + $0xd0] sm:$0xff] }
  0x1e   : > { %1093 = vmatprep.subr.bf16.mxu0 %v1092_v18  ;;  %v1148_v19 = vpack.c.bf16 %v881_v17, %v880_v16  ;;  %v682_v25 = vld [vmem:[%s1616_s5 + $0x30] sm:$0xff]  ;;  %v683_v26 = vld [vmem:[%s1616_s5 + $0x38] sm:$0xff]  ;;  %v887_v29 = vld [vmem:[%s1615_s4] ss:$0 sm:$0xff]  ;;  %p1228_p3 = pnand %p1227_p2, %p1221_p13 }
  0x1f   : > { %1123 = vmatpush3.bf16.msra.mxu1 %v1120_v37  ;;  %v888_v36 = vld [vmem:[%s1617_s6] ss:$0 sm:$0xff] }
  0x20   : > { %1010 = vmatprep.subr.mxu1 %v871_v39 }
  0x21   : > { %1095 = vmatpush3.bf16.msra.mxu0 %v1092_v18 }
  0x22   : > { %1097 = vmatprep.subr.bf16.mxu0 %v1096_v21 }
  0x23   : > { %1011 = vmatpush3.msra.mxu1 %v871_v39 }
  0x24   : > { %1125 = vmatprep.subr.bf16.mxu1 %v1124_v42 }
  0x25   : > { %1099 = vmatpush3.bf16.msra.mxu0 %v1096_v21  ;;  %v883_v21 = vld [vmem:[%s1614_s3 + $0xc8] sm:$0xff] }
  0x26   : > { %1101 = vmatprep.subr.bf16.mxu0 %v1100_v24  ;;  %v1152_v22 = vpack.c.bf16 %v883_v21, %v882_v20 }
  0x29   : > { %1103 = vmatpush3.bf16.msra.mxu0 %v1100_v24 }
  0x2a   : > { %1105 = vmatprep.subr.bf16.mxu0 %v1104_v27 }
  0x2d   : > { %1107 = vmatpush3.bf16.msra.mxu0 %v1104_v27  ;;  %v1168_v27 = vpack.c.bf16 %v683_v26, %v682_v25 }
  0x2e   : > { %1157 = vmatprep.subr.bf16.mxu0 %v1156_v46 }
  0x30   : > { %992 = vmatmul.mubr.f32.vlgmr.msra.gmra.mrb[0].mxu0 %v1440_v28 }
  0x31   : > { %1159 = vmatpush3.bf16.msra.mxu0 %v1156_v46 }
  0x32   : > { %1161 = vmatprep.subr.bf16.mxu0 %v1160_v48 }
  0x35   : > { %1163 = vmatpush3.bf16.msra.mxu0 %v1160_v48 }
  0x36   : > { %1165 = vmatprep.subr.bf16.mxu0 %v1164_v51 }
  0x39   : > { %1167 = vmatpush3.bf16.msra.mxu0 %v1164_v51 }
  0x3a   : > { %1169 = vmatprep.subr.bf16.mxu0 %v1168_v27 }
  0x3d   : > { %1171 = vmatpush3.bf16.msra.mxu0 %v1168_v27 }
 0x103   : > { %v993_v53 = vpop.f32.mrb[0].mxu0 }
 0x104   : > { %v374_v54 = vadd.f32 %v993_v53, %v862_v52  ;;  %v368_v55 = vpop.f32.mrb[1].mxu0 }
 0x105   : > { %v369_v56 = vadd.f32 %v862_v52, %v368_v55 }
 0x106   : > { %v378_v57 = vmax.f32 %v374_v54, 0.0 }
 0x107   : > { %v377_v58 = vmax.f32 %v369_v56, 0.0 }
 0x108   : > { %384 = vst.msk [vmem:[#allocation2 + $0x10] sm:$0xff] %vm382_vm1, %v378_v57 }
 0x109   : > { %383 = vst.msk [vmem:[#allocation2 + $0x8] sm:$0xff] %vm382_vm1, %v377_v58 }
 0x10f   : > { %v397_v63 = vld [vmem:[#allocation2 + $0x10] sm:$0xff] }
 0x110   : > { %v396_v61 = vld [vmem:[#allocation2 + $0x8] sm:$0xff]  ;;  %v571_v24 = vld [vmem:[#allocation2 + $0x11] sm:$0xff] }
 0x111   : > { %1012 = vmatprep.mubr.msk.f32.mxu1 %vm382_vm1, %v396_v61  ;;  %v385_v2 = vld [vmem:[#allocation2 + $0x7] sm:$0xff]  ;;  %v386_v15 = vld [vmem:[#allocation2 + $0xf] sm:$0xff] }
 0x112   : > { %1013 = vmatmul.mubr.msk.f32.vlgmr.msra.gmra.mrb[0].mxu1 %vm382_vm1, %v397_v63  ;;  %v570_v18 = vld [vmem:[#allocation2 + $0x9] sm:$0xff] }
 0x113   : > { %1127 = vmatpush3.bf16.msra.mxu1 %v1124_v42  ;;  %1033 = vmatprep.mubr.msk.f32.mxu1 %vm382_vm1, %v385_v2 }
 0x114   : > { %1129 = vmatprep.subr.bf16.mxu1 %v1128_v62 }
 0x117   : > { %1131 = vmatpush3.bf16.msra.mxu1 %v1128_v62 }
 0x118   : > { %1133 = vmatprep.subr.bf16.mxu1 %v1132_v3 }
 0x11b   : > { %1135 = vmatpush3.bf16.msra.mxu1 %v1132_v3 }
 0x11c   : > { %1137 = vmatprep.subr.bf16.mxu1 %v1136_v6 }
 0x11f   : > { %1139 = vmatpush3.bf16.msra.mxu1 %v1136_v6 }
 0x120   : > { %1031 = vmatprep.subr.mxu1 %v395_v7 }
 0x123   : > { %1032 = vmatpush3.msra.mxu1 %v395_v7 }
 0x124   : > { %1034 = vmatmul.mubr.msk.f32.vlgmr.msra.gmra.mrb[0].mxu1 %vm382_vm1, %v386_v15  ;;  %1141 = vmatprep.subr.bf16.mxu1 %v1140_v12 }
 0x125   : > { %1143 = vmatpush3.bf16.msra.mxu1 %v1140_v12  ;;  %1054 = vmatprep.mubr.msk.f32.mxu1 %vm382_vm1, %v570_v18 }
 0x126   : > { %1145 = vmatprep.subr.bf16.mxu1 %v1144_v14 }
 0x129   : > { %1147 = vmatpush3.bf16.msra.mxu1 %v1144_v14 }
 0x12a   : > { %1149 = vmatprep.subr.bf16.mxu1 %v1148_v19 }
 0x12d   : > { %1151 = vmatpush3.bf16.msra.mxu1 %v1148_v19 }
 0x12e   : > { %1153 = vmatprep.subr.bf16.mxu1 %v1152_v22 }
 0x131   : > { %1155 = vmatpush3.bf16.msra.mxu1 %v1152_v22 }
 0x132   : > { %1052 = vmatprep.subr.mxu1 %v884_v23 }
 0x135   : > { %1053 = vmatpush3.msra.mxu1 %v884_v23 }
 0x136   : > { %1055 = vmatmul.mubr.msk.f32.vlgmr.msra.gmra.mrb[0].mxu1 %vm382_vm1, %v571_v24 }
 0x209   : > { %v1056_v30 = vpop.f32.mrb[0].mxu1 }
 0x20a   : > { %v673_v31 = vadd.f32 %v1056_v30, %v887_v29  ;;  %v654_v32 = vpop.f32.mrb[1].mxu1 }
 0x20b   : > { %v672_v33 = vadd.f32 %v887_v29, %v654_v32 }
 0x20c   : > { %v675_v35 = vmax.f32 %v673_v31, 0.0 }
 0x20d   : > { %v674_v34 = vmax.f32 %v672_v33, 0.0 }
 0x20f   : > { %1073 = vmatprep.mubr.msk.f32.mxu0 %vm691_vm2, %v674_v34 }
 0x210   : > { %1074 = vmatmul.mubr.msk.f32.vlgmr.msra.gmra.mrb[2].mxu0 %vm691_vm2, %v675_v35 }
 0x2e3   : > { %v1075_v37 = vpop.f32.mrb[2].mxu0 }
 0x2e4   : > { %v770_v38 = vadd.f32 %v1075_v37, %v888_v36  ;;  %v764_v39 = vpop.f32.mrb[3].mxu0 }
 0x2e5   : > { %v765_v40 = vadd.f32 %v888_v36, %v764_v39 }
 0x2e6   : > { %v774_v41 = vadd.f32 %v770_v38, %v1440_v28 }
 0x2e7   : > { %v773_v42 = vadd.f32 %v765_v40, %v1412_v13 }
 0x2e8   : > { %v776_v43 = vmax.f32 %v774_v41, 0.0 }
 0x2e9   : > { %v775_v44 = vmax.f32 %v773_v42, 0.0 }
 0x2ea   : > { %778 = vst [vmem:[%s271_s18 + $0x8] sm:$0xff] %v776_v43 }
 0x2eb   : > { %777 = vst [vmem:[%s271_s18] sm:$0xff] %v775_v44 }
 0x2ec   : > { %1231 = shalt.err (!%p1228_p3)
}
 0x2ed   : > { %s1232_s13 = scalar_lea.hbm %s1568_s22, 256  ;;  %s1236_s17 = scalar_lea.hbm %s1618_s7, 512 }
 0x2ee   : > { %p1233_p4 = scmp.ne.s32.totalorder %s1568_s22, %s1232_s13  ;;  %p1237_p9 = scmp.lt.u32.totalorder %s1568_s22, %s1618_s7 }
 0x2ef   : > { %p1238_p10 = scmp.lt.u32.totalorder %s1236_s17, %s1232_s13  ;;  %p1240_p12 = scmp.lt.u32.totalorder %s1232_s13, %s1568_s22 }
 0x2f0   : > { %p1234_p7 = pnand %p1233_p4, %p1364_p5 }
 0x2f1   : > { %p1239_p11 = por %p1238_p10, %p1237_p9 }
 0x2f2   : > { %p1235_p8 = pneg %p1234_p7 }
 0x2f3   : > { %p1241_p13 = por %p1240_p12, %p1239_p11 }
 0x2f5   : > { %p1242_p0 = pnand %p1241_p13, %p1235_p8 }
 0x2f7   : > { %1245 = shalt.err (!%p1242_p0)
}
 0x2f8   : > { %s1284_s15 = smov 128   ;;  %s1285_s21 = smov 8  }
 0x2f9   : > { %1176 = dma.vmem_to_hbm [thread:$0]  (%p1364_p5), %s1563_s19, 256, %s1568_s22, %s1570_s23, %s1284_s15, %s1284_s15, %s1285_s21  }
 0x2fa PF: > { %p1182_p1 = scmp.ge.s32.totalorder %s1280_s27, 2  ;;  %s808_s28 = sand.u32 1, %s1268_s24  }
 0x2fb   : > { %s809_s29 = scalar_lea.sflag [#allocation4], %s808_s28 }
 0x2fc   : > { %p1179_p2 = pnand %p1182_p1, %p1368_p6 }
 0x2fe   : > { %1263 = dma.done.wait (!%p1179_p2), %s809_s29, 256  }
 0x2ff   : > { %1265 = vsyncadd (!%p1179_p2), %s809_s29, 4294967040  ;;  %p17_p3 = scmp.ge.s32.totalorder %s1351_s30, 4   ;;  %s1621_s24 = smov %s1272_s25 }
 0x300   : > { %s1622_s25 = smov %s1276_s26  ;;  %s1623_s26 = smov %s1362_s10 }
 0x301   : > { %s1624_s27 = smov %s1351_s30  ;;  %19 = sbr.rel (!%p17_p3) target bundleno = 3 (0x3), region = 85 }
 0x308   :  { %814 = vsyncpa [#allocation4], 1 }
 0x309   :  { %816 = vsyncpa [#allocation4 + $0x1], 1 }

</bundles_post_ra>
